<compile_context>
chip_gen: v6e
topology: v6e:2x2x1
jax: 0.10.0
libtpu: 0.0.40
codegen_flags: <defaults>
</compile_context>

<pallas_src>
import jax
import jax.numpy as jnp
from jax.experimental import pallas as pl
from jax.experimental.pallas import tpu as pltpu

# torchvision.transforms.Normalize(mean=[sum([.485,.456,.406])], std=[sum([.229,.224,.225])])
PROMPT_NORM_MEAN = 0.485 + 0.456 + 0.406      # 1.347
PROMPT_NORM_STD = 0.229 + 0.224 + 0.225       # 0.678
PROMPT_NORM_INV_STD = 1.0 / PROMPT_NORM_STD   # constant multiply instead of divide


# ---------------------------------------------------------------------------
# Hardware introspection (defensive: fall back to conservative defaults).
# ---------------------------------------------------------------------------
def _vmem_capacity_bytes():
    try:
        return int(pltpu.get_tpu_info().vmem_capacity_bytes)
    except Exception:
        return 64 << 20           # v7x per-TC capacity: the smallest generation


def _num_tensorcores():
    try:
        info = pltpu.get_tpu_info()
        for attr in ("num_cores", "core_count", "num_tensorcores"):
            v = getattr(info, attr, None)
            if isinstance(v, int) and v > 0:
                return v
    except Exception:
        pass
    return 1                      # v5e/v6e: single TensorCore per chip


def _pick_block_b(B, D, aggregation):
    """Batch-tile size: ~1-2 MiB per block buffer, VMEM- and megacore-aware."""
    if B <= 8 or B % 8 != 0:
        # Tiny / odd batch: single full-extent block (exempt from the (8,128) rule).
        return B
    vmem_cap = _vmem_capacity_bytes()
    out_mult = 2 if aggregation == "prepend" else 1
    # Keep double-buffered in + out blocks comfortably inside the smallest
    # scoped-VMEM default (v5e: 16 MiB) and well under v7x's 64 MiB physical.
    per_block_budget = min(2 << 20, vmem_cap // (8 * (1 + out_mult)))
    cand = max(8, (per_block_budget // (4 * D)) // 8 * 8)
    # Megacore (v7x): make sure there are >= num_cores grid steps once the op
    # is large enough for the "parallel" sharding to matter.
    nc = _num_tensorcores()
    if nc > 1 and B * D * 4 >= (512 << 10):
        cand = min(cand, max(8, (B // nc) // 8 * 8))
    bb = min(B, cand)
    bb -= bb % 8
    while bb > 8 and B % bb != 0:
        bb -= 8
    if bb < 8 or B % bb != 0:
        bb = B
    return bb


# ---------------------------------------------------------------------------
# Kernel: pure broadcast aggregation of h with the precomputed prompt mean.
# ---------------------------------------------------------------------------
def _make_prompter_kernel(aggregation: str):
    def kernel(h_ref, pm_ref, o_ref):
        p_mean = pm_ref[...]                              # (1, D), lane-dense
        if aggregation == "add":
            o_ref[...] = h_ref[...] + p_mean
        elif aggregation == "multiply":
            o_ref[...] = h_ref[...] * p_mean
        elif aggregation == "prepend":
            # cat((prompt, h), dim=1) then token-mean =>
            #   slab 0: prompt mean broadcast over batch, slab 1: h.
            # Whole-slab writes of a (2, Bb, D) block keep the stores
            # tile-aligned (no masked stores at sublane offset B).
            bb, d = h_ref.shape
            o_ref[0] = jnp.broadcast_to(p_mean, (bb, d))
            o_ref[1] = h_ref[...]
        else:
            raise NotImplementedError(aggregation)

    return kernel


# ---------------------------------------------------------------------------
# Wrapper.
# ---------------------------------------------------------------------------
def prompter_forward(h, prompt_embeddings, aggregation: str = "add",
                     block_b=None, use_pallas=None):
    """h: (B, D) f32, prompt_embeddings: (T, D) f32 (PyTorch's leading 1 squeezed)."""
    B, D = h.shape
    T, D2 = prompt_embeddings.shape
    assert D == D2, "prompt_size must match h's feature dim"

    # Parameter-only prompt reduction, hoisted out of the grid loop.
    # mean_t(Normalize(p)) == (sum_t(p)) * (inv_std / T) - mean * inv_std.
    scale = PROMPT_NORM_INV_STD / T
    shift = PROMPT_NORM_MEAN * PROMPT_NORM_INV_STD
    p_mean = jnp.sum(prompt_embeddings, axis=0, keepdims=True) * scale - shift  # (1, D)

    # Small-shape escape hatch: let XLA fuse the trivial elementwise tail.
    if use_pallas is None:
        use_pallas = (B * D) >= (64 * 1024)
    if not use_pallas:
        if aggregation == "add":
            return h + p_mean
        if aggregation == "multiply":
            return h * p_mean
        if aggregation == "prepend":
            return jnp.concatenate([jnp.broadcast_to(p_mean, (B, D)), h], axis=0)
        raise NotImplementedError(aggregation)

    if block_b is None:
        block_b = _pick_block_b(B, D, aggregation)
    assert B % block_b == 0, "block_b must divide B"
    assert block_b == B or block_b % 8 == 0, "block_b must be 8-aligned or equal B"
    nb = B // block_b

    out_mult = 2 if aggregation == "prepend" else 1
    out_rows = out_mult * B

    # Explicit, generation-safe VMEM budget (double-buffered in/out + prompt row).
    blk_bytes = 4 * block_b * D
    need = 2 * blk_bytes + 2 * out_mult * blk_bytes + 2 * 4 * D
    vmem_limit = int(min(32 << 20, max(16 << 20, 2 * need)))

    cost = pl.CostEstimate(
        flops=out_rows * D,
        transcendentals=0,
        bytes_accessed=(B * D + D + out_rows * D) * 4,
    )
    kernel = _make_prompter_kernel(aggregation)
    cparams = pltpu.CompilerParams(
        dimension_semantics=("parallel",),
        vmem_limit_bytes=vmem_limit,
    )

    h_spec = pl.BlockSpec((block_b, D), lambda i: (i, 0))
    # Grid-invariant (1, D) prompt-mean block: resident across all batch tiles.
    pm_spec = pl.BlockSpec((1, D), lambda i: (0, 0))

    if aggregation == "prepend":
        out3 = pl.pallas_call(
            kernel,
            out_shape=jax.ShapeDtypeStruct((2, B, D), h.dtype),
            grid=(nb,),
            in_specs=[h_spec, pm_spec],
            out_specs=pl.BlockSpec((2, block_b, D), lambda i: (0, i, 0)),
            compiler_params=cparams,
            cost_estimate=cost,
        )(h, p_mean)
        # (2, B, D) -> (2B, D): rows [0, B) = prompt mean, rows [B, 2B) = h.
        return out3.reshape(2 * B, D)

    return pl.pallas_call(
        kernel,
        out_shape=jax.ShapeDtypeStruct((B, D), h.dtype),
        grid=(nb,),
        in_specs=[h_spec, pm_spec],
        out_specs=pl.BlockSpec((block_b, D), lambda i: (i, 0)),
        compiler_params=cparams,
        cost_estimate=cost,
    )(h, p_mean)


# ---------------------------------------------------------------------------
# Plain-JAX replica of the PyTorch forward for verification.
# ---------------------------------------------------------------------------
def _reference(h, prompt_embeddings, aggregation):
    B = h.shape[0]
    T = prompt_embeddings.shape[0]
    p = (prompt_embeddings - PROMPT_NORM_MEAN) / PROMPT_NORM_STD        # (T, D)
    prompt = jnp.broadcast_to(p[None, :, :], (B, T, p.shape[1]))        # expand(B,-1,-1)
    prompt = jnp.transpose(prompt, (1, 0, 2))                           # permute(1,0,2) -> (T,B,D)
    h_exp = jnp.broadcast_to(h[None, :, :], (T, B, h.shape[1]))         # expand(T,-1,-1)
    if aggregation == "add":
        out = h_exp + prompt
    elif aggregation == "multiply":
        out = h_exp * prompt
    elif aggregation == "prepend":
        out = jnp.concatenate((prompt, h_exp), axis=1)
    else:
        raise NotImplementedError
    return jnp.mean(out, axis=0)


if __name__ == "__main__":
    # Config (args dict equivalent): init='random', number_prompts=8, prompt_size=128
    num_tokens = 8
    prompt_size = 128
    batch = 2

    key = jax.random.PRNGKey(0)
    k_prompt, k_h, k_h2 = jax.random.split(key, 3)
    # nn.init.uniform_(prompt_embeddings, 0.0, 1.0) -> deterministic uniform init
    prompt_embeddings = jax.random.uniform(
        k_prompt, (num_tokens, prompt_size), dtype=jnp.float32, minval=0.0, maxval=1.0
    )
    h = jax.random.normal(k_h, (batch, prompt_size), dtype=jnp.float32)

    # Shipped tiny shapes: force the Pallas path so the kernel is exercised,
    # and check the auto (fused-jnp) path agrees.
    for agg in ("add", "multiply", "prepend"):
        out = jax.block_until_ready(
            prompter_forward(h, prompt_embeddings, agg, use_pallas=True))
        ref = _reference(h, prompt_embeddings, agg)
        assert out.shape == ref.shape, (agg, out.shape, ref.shape)
        assert jnp.allclose(out, ref, atol=1e-5, rtol=1e-5), f"pallas mismatch for {agg}"
        out_auto = jax.block_until_ready(prompter_forward(h, prompt_embeddings, agg))
        assert jnp.allclose(out_auto, ref, atol=1e-5, rtol=1e-5), f"auto mismatch for {agg}"

    # Exercise the tiled (multi-block) grid path once with an explicit block_b.
    B2 = 128
    h2 = jax.random.normal(k_h2, (B2, prompt_size), dtype=jnp.float32)
    for agg in ("add", "prepend"):
        out = jax.block_until_ready(
            prompter_forward(h2, prompt_embeddings, agg, block_b=32, use_pallas=True))
        ref = _reference(h2, prompt_embeddings, agg)
        assert out.shape == ref.shape, (agg, out.shape, ref.shape)
        assert jnp.allclose(out, ref, atol=1e-5, rtol=1e-5), f"tiled mismatch for {agg}"

    print("KERNEL_OK")
</pallas_src>

<mosaic_0001>
module attributes {stable_mosaic.version = 11 : i64} {
  func.func @kernel(%arg0: i32, %arg1: memref<2x128xf32, #tpu.memory_space<vmem>>, %arg2: memref<1x128xf32, #tpu.memory_space<vmem>>, %arg3: memref<2x128xf32, #tpu.memory_space<vmem>>) attributes {dimension_semantics = [#tpu.dimension_semantics<parallel>], iteration_bounds = array<i64: 1>, scalar_prefetch = 0 : i64, scratch_operands = 0 : i64, tpu.core_type = #tpu.core_type<tc>, window_params = [{transform_indices = @transform_0, window_bounds = array<i64: 2, 128>}, {pipeline_mode = #tpu.pipeline_mode<synchronous>, transform_indices = @transform_1, window_bounds = array<i64: 1, 128>}, {transform_indices = @transform_2, window_bounds = array<i64: 2, 128>}]} {
    %c0 = arith.constant 0 : index
    %c0_0 = arith.constant 0 : index
    %0 = vector.load %arg2[%c0, %c0_0] : memref<1x128xf32, #tpu.memory_space<vmem>>, vector<1x128xf32>
    %c0_1 = arith.constant 0 : index
    %c0_2 = arith.constant 0 : index
    %1 = vector.load %arg1[%c0_1, %c0_2] : memref<2x128xf32, #tpu.memory_space<vmem>>, vector<2x128xf32>
    %2 = vector.broadcast %0 : vector<1x128xf32> to vector<2x128xf32>
    %3 = arith.addf %1, %2 : vector<2x128xf32>
    %c0_3 = arith.constant 0 : index
    %c0_4 = arith.constant 0 : index
    %4 = vector.load %arg3[%c0_3, %c0_4] : memref<2x128xf32, #tpu.memory_space<vmem>>, vector<2x128xf32>
    tpu.vector_store %arg3[%c0_3, %c0_4], %3 {strides = array<i32>} : memref<2x128xf32, #tpu.memory_space<vmem>>, vector<2x128xf32>,
    return
  }
  func.func @transform_0(%arg0: i32) -> (i32, i32) {
    %c0_i32 = arith.constant 0 : i32
    %c0_i32_0 = arith.constant 0 : i32
    return %arg0, %c0_i32 : i32, i32
  }
  func.func @transform_1(%arg0: i32) -> (i32, i32) {
    %c0_i32 = arith.constant 0 : i32
    %c0_i32_0 = arith.constant 0 : i32
    %c0_i32_1 = arith.constant 0 : i32
    return %c0_i32, %c0_i32_0 : i32, i32
  }
  func.func @transform_2(%arg0: i32) -> (i32, i32) {
    %c0_i32 = arith.constant 0 : i32
    %c0_i32_0 = arith.constant 0 : i32
    return %arg0, %c0_i32 : i32, i32
  }
}

</mosaic_0001>

<bundles_post_ra>
// kernel: tpu_custom_call.1
= control target key start
LH: loop header
LB: loop body
LE: loop exit
PB: predicated region body
PF: predicated region fallthrough
CT: control target
= control target key end

     0   :  { %7 = vsyncpa [#allocation3], 0  ;;  %s122_s0 = inlined_call_operand.hbm [shape: f32[2,128], index: 0, kind: input, shape index: {}]   ;;  %s123_s1 = inlined_call_operand.vmem [shape: f32[1,128], index: 1, kind: input, shape index: {}]   ;;  %s124_s2 = inlined_call_operand.hbm [shape: f32[2,128], index: 2, kind: output, shape index: {}]  }
   0x1   :  { %8 = vsyncpa [#allocation4], 0  ;;  %s96_s9 = smov [#allocation2]  }
   0x2   :  { %s15_s10 = sshll.u32 %s96_s9, 4  ;;  %s16_s10 = int_to_ptr.vmem [resolvable:$true] %s15_s10 }
   0x3   :  { %s60_s11 = scalar_lea.vmem %s16_s10, 32  ;;  %p65_p1 = scmp.lt.s32.totalorder %s16_s10, %s16_s10 }
   0x4   :  { %p61_p0 = scmp.ne.s32.totalorder %s16_s10, %s60_s11  ;;  %p66_p2 = scmp.lt.s32.totalorder %s60_s11, %s60_s11 }
   0x6   :  { %p67_p3 = por %p66_p2, %p65_p1 }
   0x8   :  { %p68_p4 = pnand %p67_p3, %p61_p0 }
   0xa   :  { %71 = shalt.err (!%p68_p4)
}
   0xb   :  { %18 = dma.hbm_to_vmem [thread:$0]  %s122_s0, 32, %s16_s10, [#allocation3]  }
   0xc   :  { %92 = dma.done.wait [#allocation3], 32  }
   0xd   :  { %93 = vsyncadd [#allocation3], 4294967264  ;;  %s97_s14 = smov [#allocation5]   ;;  %v49_v0 = vld [vmem:[%s123_s1] ss:$0 sm:$0xff] }
   0xe   :  { %s40_s15 = sshll.u32 %s97_s14, 4  ;;  %v25_v1 = vld [vmem:[#allocation2] sm:$0x3]  ;;  %s41_s15 = int_to_ptr.vmem [resolvable:$true] %s40_s15 }
   0xf   :  { %v32_v2 = vadd.f32 %v49_v0, %v25_v1  ;;  %s72_s18 = scalar_lea.vmem %s41_s15, 32  ;;  %p77_p6 = scmp.lt.s32.totalorder %s41_s15, %s41_s15 }
  0x10   :  { %p73_p5 = scmp.ne.s32.totalorder %s41_s15, %s72_s18  ;;  %p78_p7 = scmp.lt.s32.totalorder %s72_s18, %s72_s18 }
  0x11   :  { %33 = vst [vmem:[#allocation5] sm:$0x3] %v32_v2 }
  0x12   :  { %p79_p8 = por %p78_p7, %p77_p6 }
  0x14   :  { %p80_p9 = pnand %p79_p8, %p73_p5 }
  0x16   :  { %83 = shalt.err (!%p80_p9)
}
  0x17   :  { %43 = dma.vmem_to_hbm [thread:$0]  %s41_s15, 32, %s124_s2, [#allocation4]  }
  0x18   :  { %94 = dma.done.wait [#allocation4], 32  }
  0x19   :  { %95 = vsyncadd [#allocation4], 4294967264 }
  0x1a   :  { %47 = vsyncpa [#allocation3], 1 }
  0x1b   :  { %48 = vsyncpa [#allocation4], 1 }

</bundles_post_ra>
